<compile_context>
chip_gen: v7x
topology: tpu7x:2x2x1
jax: 0.10.0
libtpu: 0.0.40
codegen_flags: <defaults>
</compile_context>

<pallas_src>
import math
from functools import partial

import jax
import jax.numpy as jnp
from jax.experimental import pallas as pl
from jax.experimental.pallas import tpu as pltpu


_VMEM = pltpu.MemorySpace.VMEM
_VMEM_LIMIT_BYTES = 32 * 1024 * 1024   # within scoped VMEM on v5e/v6e/v7x
_HW_TILE = 512                         # target spatial rows per block (mult. of 8)


# ----------------------------------------------------------------------------
# Config helpers (mirror the PyTorch module)
# ----------------------------------------------------------------------------
def _make_divisible(ch, divisor=8, min_ch=None):
    if min_ch is None:
        min_ch = divisor
    new_ch = max(min_ch, int(ch + divisor / 2) // divisor * divisor)
    if new_ch < 0.9 * ch:
        new_ch += divisor
    return new_ch


def _round_up(x, m):
    return (x + m - 1) // m * m


class Cnf:
    """InvertedResidualConfig equivalent."""

    def __init__(self, input_c, kernel, expanded_c, out_c, use_se, activation,
                 stride, width_multi=1.0):
        self.input_c = _make_divisible(input_c * width_multi, 8)
        self.kernel = kernel
        self.expanded_c = _make_divisible(expanded_c * width_multi, 8)
        self.out_c = _make_divisible(out_c * width_multi, 8)
        self.use_se = use_se
        self.use_hs = activation == 'HS'
        self.stride = stride


# ----------------------------------------------------------------------------
# In-kernel math helpers
# ----------------------------------------------------------------------------
def _apply_act(x, act):
    if act == 'relu':
        return jnp.maximum(x, 0.0)
    if act == 'hardswish':
        return x * jnp.clip(x + 3.0, 0.0, 6.0) * (1.0 / 6.0)
    if act == 'hardsigmoid':
        return jnp.clip(x * (1.0 / 6.0) + 0.5, 0.0, 1.0)
    return x  # identity


# ----------------------------------------------------------------------------
# Pallas kernels
# ----------------------------------------------------------------------------
def _conv1x1_kernel(*refs, act, has_se, has_res):
    """Fused 1x1-conv (matmul) + folded BN + activation [+ SE scale, + residual].

    refs = (x, [se], [res], w, sb, out).  x/w bf16, accumulate f32 on the MXU.
    """
    idx = 0
    x_ref = refs[idx]; idx += 1
    se_ref = refs[idx] if has_se else None
    idx += int(has_se)
    res_ref = refs[idx] if has_res else None
    idx += int(has_res)
    w_ref, sb_ref, o_ref = refs[idx], refs[idx + 1], refs[idx + 2]

    x = x_ref[0]                                           # (t, Cin) bf16
    if has_se:
        # SE channel scale fused into the project conv (no extra HBM pass).
        x = (x.astype(jnp.float32) * se_ref[0]).astype(jnp.bfloat16)
    acc = jnp.dot(x, w_ref[...], preferred_element_type=jnp.float32)
    acc = acc * sb_ref[0:1] + sb_ref[1:2]                  # folded BatchNorm
    acc = _apply_act(acc, act)
    if has_res:
        # Residual add fused into the project conv.
        acc = acc + res_ref[0].astype(jnp.float32)
    o_ref[0] = acc.astype(o_ref.dtype)


def _dw_stride1_kernel(x_ref, w_ref, sb_ref, o_ref, *, k, ho, wo, act):
    """Depthwise conv (stride 1): taps formed in-kernel from the padded tile."""
    acc = None
    for ki in range(k):
        for kj in range(k):
            tap = x_ref[0, ki:ki + ho, kj:kj + wo, :].astype(jnp.float32)
            term = tap * w_ref[ki * k + kj]
            acc = term if acc is None else acc + term
    acc = acc * sb_ref[0] + sb_ref[1]
    o_ref[0] = _apply_act(acc, act).astype(o_ref.dtype)    # single store / tile


def _dw_stride2_kernel(x00_ref, x01_ref, x10_ref, x11_ref, w_ref, sb_ref,
                       o_ref, *, k, ho, wo, act):
    """Depthwise conv (stride 2) via polyphase inputs -> contiguous taps only."""
    phase = ((x00_ref, x01_ref), (x10_ref, x11_ref))
    acc = None
    for ki in range(k):
        for kj in range(k):
            p_ref = phase[ki % 2][kj % 2]
            a, b = ki // 2, kj // 2
            tap = p_ref[0, a:a + ho, b:b + wo, :].astype(jnp.float32)
            term = tap * w_ref[ki * k + kj]
            acc = term if acc is None else acc + term
    acc = acc * sb_ref[0] + sb_ref[1]
    o_ref[0] = _apply_act(acc, act).astype(o_ref.dtype)


def _se_kernel(x_ref, w1_ref, b1_ref, w2_ref, b2_ref, o_ref, *, inv_hw):
    """Fused SE squeeze: avgpool -> fc1/relu -> fc2/hardsigmoid (per sample)."""
    pooled = jnp.sum(x_ref[0].astype(jnp.float32), axis=0, keepdims=True) * inv_hw
    h = jnp.dot(pooled.astype(jnp.bfloat16), w1_ref[...],
                preferred_element_type=jnp.float32) + b1_ref[...]
    h = jnp.maximum(h, 0.0)
    s = jnp.dot(h.astype(jnp.bfloat16), w2_ref[...],
                preferred_element_type=jnp.float32) + b2_ref[...]
    o_ref[0] = jnp.clip(s * (1.0 / 6.0) + 0.5, 0.0, 1.0)   # hardsigmoid


def _head_kernel(x_ref, w1_ref, b1_ref, w2_ref, b2_ref, feat_ref, out_ref, *,
                 inv_hw):
    """Fused classifier head: avgpool -> fc1/hardswish -> fc2."""
    feat = jnp.sum(x_ref[...].astype(jnp.float32), axis=1) * inv_hw  # (N, C)
    feat_ref[...] = feat
    h = jnp.dot(feat.astype(jnp.bfloat16), w1_ref[...],
                preferred_element_type=jnp.float32) + b1_ref[...]
    h = _apply_act(h, 'hardswish')
    # TODO(synk): Dropout(p=0.2) is identity at inference time.
    out_ref[...] = jnp.dot(h.astype(jnp.bfloat16), w2_ref[...],
                           preferred_element_type=jnp.float32) + b2_ref[...]


# ----------------------------------------------------------------------------
# Pallas-call wrappers
# ----------------------------------------------------------------------------
def _pick_hw_tile(hw, target=_HW_TILE):
    """Pick a spatial-row tile; pad HW so the tile divides it when tiling."""
    if hw <= target:
        return hw, hw
    hw_pad = _round_up(hw, target)
    return target, hw_pad


def conv1x1_bn_act(x, w, sb, act, se=None, res=None, out_dtype=jnp.bfloat16):
    """x: (N, HW, Cin) bf16; w: (Cin, Cout) bf16; sb: (2, Cout) f32.
    se: (N, 1, Cin) f32 or None; res: (N, HW, Cout) bf16 or None."""
    n, hw, cin = x.shape
    cout = w.shape[1]
    t, hw_pad = _pick_hw_tile(hw)
    if hw_pad != hw:
        rows = ((0, 0), (0, hw_pad - hw), (0, 0))
        x = jnp.pad(x, rows)
        if res is not None:
            res = jnp.pad(res, rows)
    grid = (n, hw_pad // t)
    has_se = se is not None
    has_res = res is not None

    in_specs = [pl.BlockSpec((1, t, cin), lambda i, j: (i, j, 0))]
    args = [x]
    if has_se:
        in_specs.append(pl.BlockSpec((1, 1, cin), lambda i, j: (i, 0, 0)))
        args.append(se)
    if has_res:
        in_specs.append(pl.BlockSpec((1, t, cout), lambda i, j: (i, j, 0)))
        args.append(res)
    in_specs += [pl.BlockSpec((cin, cout), lambda i, j: (0, 0)),
                 pl.BlockSpec((2, cout), lambda i, j: (0, 0))]
    args += [w, sb]

    out_bytes = n * hw_pad * cout * jnp.dtype(out_dtype).itemsize
    in_bytes = sum(a.size * a.dtype.itemsize for a in args)
    cost = pl.CostEstimate(flops=2 * n * hw_pad * cin * cout,
                           transcendentals=0,
                           bytes_accessed=int(in_bytes + out_bytes))

    out = pl.pallas_call(
        partial(_conv1x1_kernel, act=act, has_se=has_se, has_res=has_res),
        grid=grid,
        in_specs=in_specs,
        out_specs=pl.BlockSpec((1, t, cout), lambda i, j: (i, j, 0)),
        out_shape=jax.ShapeDtypeStruct((n, hw_pad, cout), out_dtype),
        compiler_params=pltpu.CompilerParams(
            dimension_semantics=("parallel", "parallel"),
            vmem_limit_bytes=_VMEM_LIMIT_BYTES),
        cost_estimate=cost,
    )(*args)
    if hw_pad != hw:
        out = out[:, :hw, :]
    return out


def dwconv_bn_act(x, H, W, w_taps, sb, k, stride, act):
    """Depthwise conv + folded BN + act.  x: (N, H*W, C) bf16."""
    n, _, c = x.shape
    pad = (k - 1) // 2
    xp = jnp.pad(x.reshape(n, H, W, c),
                 ((0, 0), (pad, pad), (pad, pad), (0, 0)))
    Hp, Wp = H + 2 * pad, W + 2 * pad
    ho = (Hp - k) // stride + 1
    wo = (Wp - k) // stride + 1

    cparams = pltpu.CompilerParams(dimension_semantics=("parallel",),
                                   vmem_limit_bytes=_VMEM_LIMIT_BYTES)
    out_shape = jax.ShapeDtypeStruct((n, ho, wo, c), x.dtype)
    w_spec = pl.BlockSpec((k * k, 1, 1, c), lambda i: (0, 0, 0, 0))
    sb_spec = pl.BlockSpec((2, 1, 1, c), lambda i: (0, 0, 0, 0))
    out_spec = pl.BlockSpec((1, ho, wo, c), lambda i: (i, 0, 0, 0))
    bytes_acc = (xp.size * xp.dtype.itemsize
                 + w_taps.size * w_taps.dtype.itemsize
                 + sb.size * sb.dtype.itemsize
                 + n * ho * wo * c * xp.dtype.itemsize)
    cost = pl.CostEstimate(flops=2 * n * ho * wo * c * k * k,
                           transcendentals=0, bytes_accessed=int(bytes_acc))

    if stride == 1:
        out = pl.pallas_call(
            partial(_dw_stride1_kernel, k=k, ho=ho, wo=wo, act=act),
            grid=(n,),
            in_specs=[pl.BlockSpec((1, Hp, Wp, c), lambda i: (i, 0, 0, 0)),
                      w_spec, sb_spec],
            out_specs=out_spec, out_shape=out_shape,
            compiler_params=cparams, cost_estimate=cost,
        )(xp, w_taps, sb)
    elif stride == 2:
        # Polyphase decomposition in the wrapper (1x input pass, no k*k blowup);
        # taps inside the kernel are then plain contiguous slices.
        phases = [xp[:, p::2, q::2, :] for p in (0, 1) for q in (0, 1)]
        ph_specs = [pl.BlockSpec((1,) + ph.shape[1:], lambda i: (i, 0, 0, 0))
                    for ph in phases]
        out = pl.pallas_call(
            partial(_dw_stride2_kernel, k=k, ho=ho, wo=wo, act=act),
            grid=(n,),
            in_specs=ph_specs + [w_spec, sb_spec],
            out_specs=out_spec, out_shape=out_shape,
            compiler_params=cparams, cost_estimate=cost,
        )(*phases, w_taps, sb)
    else:
        raise ValueError('illegal stride value.')
    return out.reshape(n, ho * wo, c), ho, wo


def se_channel_scale(x, p):
    """Fused SE squeeze path.  x: (N, HW, C) bf16 -> scale (N, 1, C) f32."""
    n, hw, c = x.shape
    csq = p['w1'].shape[1]
    return pl.pallas_call(
        partial(_se_kernel, inv_hw=1.0 / hw),
        grid=(n,),
        in_specs=[pl.BlockSpec((1, hw, c), lambda i: (i, 0, 0)),
                  pl.BlockSpec((c, csq), lambda i: (0, 0)),
                  pl.BlockSpec((1, csq), lambda i: (0, 0)),
                  pl.BlockSpec((csq, c), lambda i: (0, 0)),
                  pl.BlockSpec((1, c), lambda i: (0, 0))],
        out_specs=pl.BlockSpec((1, 1, c), lambda i: (i, 0, 0)),
        out_shape=jax.ShapeDtypeStruct((n, 1, c), jnp.float32),
        compiler_params=pltpu.CompilerParams(
            dimension_semantics=("parallel",),
            vmem_limit_bytes=_VMEM_LIMIT_BYTES),
    )(x, p['w1'], p['b1'], p['w2'], p['b2'])


def classifier_head(x, cl):
    """Fused avgpool + fc1/hardswish + fc2.  Returns (feature f32, logits f32)."""
    n, hw, c = x.shape
    ncls_pad = cl['w2'].shape[1]
    feat, logits = pl.pallas_call(
        partial(_head_kernel, inv_hw=1.0 / hw),
        in_specs=[pl.BlockSpec(memory_space=_VMEM) for _ in range(5)],
        out_specs=(pl.BlockSpec(memory_space=_VMEM),
                   pl.BlockSpec(memory_space=_VMEM)),
        out_shape=(jax.ShapeDtypeStruct((n, c), jnp.float32),
                   jax.ShapeDtypeStruct((n, ncls_pad), jnp.float32)),
        compiler_params=pltpu.CompilerParams(
            vmem_limit_bytes=_VMEM_LIMIT_BYTES),
    )(x, cl['w1'], cl['b1'], cl['w2'], cl['b2'])
    return feat, logits


# ----------------------------------------------------------------------------
# Layer glue
# ----------------------------------------------------------------------------
def _im2col(x, k, stride):
    """First conv only (Cin=3): im2col in the wrapper is cheap."""
    n, h, w, c = x.shape
    pad = (k - 1) // 2
    xp = jnp.pad(x, ((0, 0), (pad, pad), (pad, pad), (0, 0)))
    ho = (h + 2 * pad - k) // stride + 1
    wo = (w + 2 * pad - k) // stride + 1
    cols = [xp[:, ki:ki + (ho - 1) * stride + 1:stride,
               kj:kj + (wo - 1) * stride + 1:stride, :]
            for ki in range(k) for kj in range(k)]
    pm = jnp.stack(cols, axis=3).reshape(n, ho * wo, k * k * c)
    return pm, ho, wo


def inverted_residual(x, H, W, cnf, p):
    act = 'hardswish' if cnf.use_hs else 'relu'
    inp = x
    out = x
    if cnf.expanded_c != cnf.input_c:
        e = p['expand']
        out = conv1x1_bn_act(out, e['w'], e['sb'], act)
    d = p['dw']
    out, H, W = dwconv_bn_act(out, H, W, d['w'], d['sb'],
                              cnf.kernel, cnf.stride, act)
    se = se_channel_scale(out, p['se']) if cnf.use_se else None
    use_res = cnf.stride == 1 and cnf.input_c == cnf.out_c
    pr = p['project']
    out = conv1x1_bn_act(out, pr['w'], pr['sb'], 'identity',
                         se=se, res=inp if use_res else None)
    return out, H, W


def mobilenet_v3_forward(x_nchw, params, settings):
    x = jnp.transpose(x_nchw, (0, 2, 3, 1)).astype(jnp.bfloat16)   # NCHW->NHWC
    f = params['first']
    pm, H, W = _im2col(x, k=3, stride=2)
    x = conv1x1_bn_act(pm, f['w'], f['sb'], 'hardswish')
    for cnf, bp in zip(settings, params['blocks']):
        x, H, W = inverted_residual(x, H, W, cnf, bp)
    l = params['last']
    x = conv1x1_bn_act(x, l['w'], l['sb'], 'hardswish')
    cl = params['classifier']
    feat, logits = classifier_head(x, cl)
    return {'feature': feat, 'output': logits[:, :cl['num_classes']]}


# ----------------------------------------------------------------------------
# Deterministic parameter initialization
# ----------------------------------------------------------------------------
class KeyGen:
    def __init__(self, seed):
        self._key = jax.random.PRNGKey(seed)

    def __call__(self):
        self._key, sub = jax.random.split(self._key)
        return sub


def init_params(settings, last_channel, num_classes=5):
    kg = KeyGen(1)
    eps = 1e-3

    def bn_sb(c, dw=False):
        # eval-mode fold: scale = gamma/sqrt(var+eps), bias = beta - mean*scale
        scale = jnp.full((c,), 1.0 / math.sqrt(1.0 + eps), jnp.float32)
        bias = jnp.zeros((c,), jnp.float32)
        sb = jnp.stack([scale, bias])                    # (2, C)
        return sb.reshape(2, 1, 1, c) if dw else sb

    # NOTE: weights are generated directly in matmul layout (K, Cout); real
    # PyTorch weights (Cout, Cin, kH, kW) must be permuted to (kH, kW, Cin, Cout)
    # and reshaped before use.
    def conv_w(rows, cout, fan_out):
        std = math.sqrt(2.0 / fan_out)
        w = jax.random.normal(kg(), (rows, cout), jnp.float32) * std
        return w.astype(jnp.bfloat16)                    # bf16 for the MXU

    def dw_w(k, c):
        std = math.sqrt(2.0 / (k * k))
        return jax.random.normal(kg(), (k * k, 1, 1, c), jnp.float32) * std

    params = {}
    c_first = settings[0].input_c
    params['first'] = {'w': conv_w(9 * 3, c_first, c_first * 9),
                       'sb': bn_sb(c_first)}

    blocks = []
    for cnf in settings:
        bp = {}
        if cnf.expanded_c != cnf.input_c:
            bp['expand'] = {'w': conv_w(cnf.input_c, cnf.expanded_c,
                                        cnf.expanded_c),
                            'sb': bn_sb(cnf.expanded_c)}
        bp['dw'] = {'w': dw_w(cnf.kernel, cnf.expanded_c),
                    'sb': bn_sb(cnf.expanded_c, dw=True)}
        if cnf.use_se:
            sq = _make_divisible(cnf.expanded_c // 4, 8)
            bp['se'] = {'w1': conv_w(cnf.expanded_c, sq, sq),
                        'b1': jnp.zeros((1, sq), jnp.float32),
                        'w2': conv_w(sq, cnf.expanded_c, cnf.expanded_c),
                        'b2': jnp.zeros((1, cnf.expanded_c), jnp.float32)}
        bp['project'] = {'w': conv_w(cnf.expanded_c, cnf.out_c, cnf.out_c),
                         'sb': bn_sb(cnf.out_c)}
        blocks.append(bp)
    params['blocks'] = blocks

    c_last_in = settings[-1].out_c
    c_last_out = 6 * c_last_in
    params['last'] = {'w': conv_w(c_last_in, c_last_out, c_last_out),
                      'sb': bn_sb(c_last_out)}

    # Classifier: pad the tiny num_classes output to 128 lanes (lane-dense
    # store inside the kernel); sliced back in the forward pass.
    ncls_pad = _round_up(num_classes, 128)
    w2 = jax.random.normal(kg(), (last_channel, num_classes), jnp.float32) * 0.01
    w2 = jnp.zeros((last_channel, ncls_pad), jnp.float32).at[:, :num_classes].set(w2)
    params['classifier'] = {
        'w1': (jax.random.normal(kg(), (c_last_out, last_channel),
                                 jnp.float32) * 0.01).astype(jnp.bfloat16),
        'b1': jnp.zeros((1, last_channel), jnp.float32),
        'w2': w2.astype(jnp.bfloat16),
        'b2': jnp.zeros((1, ncls_pad), jnp.float32),
        'num_classes': num_classes,
    }
    return params


# ----------------------------------------------------------------------------
if __name__ == "__main__":
    # Small MobileNetV3-style configuration (covers: no-expand/SE/stride2,
    # expand/no-SE/stride2, expand/SE/stride1 with residual).
    settings = [
        Cnf(16, 3, 16, 16, True, 'RE', 2),
        Cnf(16, 3, 64, 24, False, 'RE', 2),
        Cnf(24, 5, 48, 24, True, 'HS', 1),
    ]
    last_channel = 128
    num_classes = 5

    params = init_params(settings, last_channel, num_classes)
    x = jax.random.normal(jax.random.PRNGKey(0), (2, 3, 16, 16), jnp.float32)

    result = mobilenet_v3_forward(x, params, settings)
    jax.block_until_ready(result['feature'])
    jax.block_until_ready(result['output'])

    assert result['feature'].shape == (2, 6 * settings[-1].out_c)
    assert result['output'].shape == (2, num_classes)
    assert jnp.all(jnp.isfinite(result['feature']))
    assert jnp.all(jnp.isfinite(result['output']))
    print("KERNEL_OK")
</pallas_src>

<mosaic_0001>
module attributes {stable_mosaic.version = 11 : i64} {
  func.func @_conv1x1_kernel(%arg0: i32, %arg1: i32, %arg2: memref<1x64x27xbf16, #tpu.memory_space<vmem>>, %arg3: memref<27x16xbf16, #tpu.memory_space<vmem>>, %arg4: memref<2x16xf32, #tpu.memory_space<vmem>>, %arg5: memref<1x64x16xbf16, #tpu.memory_space<vmem>>) attributes {dimension_semantics = [#tpu.dimension_semantics<parallel>, #tpu.dimension_semantics<parallel>], iteration_bounds = array<i64: 2, 1>, scalar_prefetch = 0 : i64, scratch_operands = 0 : i64, tpu.core_type = #tpu.core_type<tc>, window_params = [{transform_indices = @transform_0, window_bounds = array<i64: 1, 64, 27>}, {pipeline_mode = #tpu.pipeline_mode<synchronous>, transform_indices = @transform_1, window_bounds = array<i64: 27, 16>}, {pipeline_mode = #tpu.pipeline_mode<synchronous>, transform_indices = @transform_2, window_bounds = array<i64: 2, 16>}, {transform_indices = @transform_3, window_bounds = array<i64: 1, 64, 16>}]} {
    %c0 = arith.constant 0 : index
    %c0_0 = arith.constant 0 : index
    %c0_1 = arith.constant 0 : index
    %0 = vector.load %arg2[%c0, %c0_0, %c0_1] : memref<1x64x27xbf16, #tpu.memory_space<vmem>>, vector<1x64x27xbf16>
    %1 = vector.shape_cast %0 : vector<1x64x27xbf16> to vector<64x27xbf16>
    %c0_2 = arith.constant 0 : index
    %c0_3 = arith.constant 0 : index
    %2 = vector.load %arg3[%c0_2, %c0_3] : memref<27x16xbf16, #tpu.memory_space<vmem>>, vector<27x16xbf16>
    %cst = arith.constant dense<0.000000e+00> : vector<64x16xf32>
    %3 = tpu.matmul %1, %2, %cst {dimension_numbers = #tpu.dot_dimension_numbers<[1], [0], [0], [1], [0, 0, 1, 1], [], []>} : vector<64x27xbf16>, vector<27x16xbf16>, vector<64x16xf32> -> vector<64x16xf32>
    %c0_4 = arith.constant 0 : index
    %c0_5 = arith.constant 0 : index
    %4 = vector.load %arg4[%c0_4, %c0_5] : memref<2x16xf32, #tpu.memory_space<vmem>>, vector<1x16xf32>
    %5 = vector.broadcast %4 : vector<1x16xf32> to vector<64x16xf32>
    %6 = arith.mulf %3, %5 : vector<64x16xf32>
    %c1 = arith.constant 1 : index
    %c0_6 = arith.constant 0 : index
    %7 = vector.load %arg4[%c1, %c0_6] : memref<2x16xf32, #tpu.memory_space<vmem>>, vector<1x16xf32>
    %8 = vector.broadcast %7 : vector<1x16xf32> to vector<64x16xf32>
    %9 = arith.addf %6, %8 : vector<64x16xf32>
    %cst_7 = arith.constant 3.000000e+00 : f32
    %10 = vector.broadcast %cst_7 : f32 to vector<64x16xf32>
    %11 = arith.addf %9, %10 : vector<64x16xf32>
    %cst_8 = arith.constant 0.000000e+00 : f32
    %cst_9 = arith.constant 6.000000e+00 : f32
    %12 = vector.broadcast %cst_8 : f32 to vector<64x16xf32>
    %13 = arith.maximumf %12, %11 : vector<64x16xf32>
    %14 = vector.broadcast %cst_9 : f32 to vector<64x16xf32>
    %15 = arith.minimumf %14, %13 : vector<64x16xf32>
    %16 = arith.mulf %9, %15 : vector<64x16xf32>
    %cst_10 = arith.constant 0.166666672 : f32
    %17 = vector.broadcast %cst_10 : f32 to vector<64x16xf32>
    %18 = arith.mulf %16, %17 : vector<64x16xf32>
    %19 = arith.truncf %18 : vector<64x16xf32> to vector<64x16xbf16>
    %c0_11 = arith.constant 0 : index
    %c0_12 = arith.constant 0 : index
    %c0_13 = arith.constant 0 : index
    %20 = vector.load %arg5[%c0_11, %c0_12, %c0_13] : memref<1x64x16xbf16, #tpu.memory_space<vmem>>, vector<1x64x16xbf16>
    %21 = vector.shape_cast %20 : vector<1x64x16xbf16> to vector<64x16xbf16>
    %22 = vector.shape_cast %19 : vector<64x16xbf16> to vector<1x64x16xbf16>
    tpu.vector_store %arg5[%c0_11, %c0_12, %c0_13], %22 {strides = array<i32>} : memref<1x64x16xbf16, #tpu.memory_space<vmem>>, vector<1x64x16xbf16>,
    return
  }
  func.func @transform_0(%arg0: i32, %arg1: i32) -> (i32, i32, i32) {
    %c0_i32 = arith.constant 0 : i32
    %c0_i32_0 = arith.constant 0 : i32
    return %arg0, %arg1, %c0_i32 : i32, i32, i32
  }
  func.func @transform_1(%arg0: i32, %arg1: i32) -> (i32, i32) {
    %c0_i32 = arith.constant 0 : i32
    %c0_i32_0 = arith.constant 0 : i32
    %c0_i32_1 = arith.constant 0 : i32
    return %c0_i32, %c0_i32_0 : i32, i32
  }
  func.func @transform_2(%arg0: i32, %arg1: i32) -> (i32, i32) {
    %c0_i32 = arith.constant 0 : i32
    %c0_i32_0 = arith.constant 0 : i32
    %c0_i32_1 = arith.constant 0 : i32
    return %c0_i32, %c0_i32_0 : i32, i32
  }
  func.func @transform_3(%arg0: i32, %arg1: i32) -> (i32, i32, i32) {
    %c0_i32 = arith.constant 0 : i32
    %c0_i32_0 = arith.constant 0 : i32
    return %arg0, %arg1, %c0_i32 : i32, i32, i32
  }
}

</mosaic_0001>

<bundles_post_ra>
// kernel: tpu_custom_call.1
= control target key start
LH: loop header
LB: loop body
LE: loop exit
PB: predicated region body
PF: predicated region fallthrough
CT: control target
= control target key end

     0   :  { %s672_s12 = smov 0   ;;  %s674_s13 = smov 0   ;;  %s732_s0 = inlined_call_operand.vmem [shape: bf16[2,64,27], index: 0, kind: input, shape index: {}]   ;;  %s733_s1 = inlined_call_operand.vmem [shape: bf16[27,16], index: 1, kind: input, shape index: {}]   ;;  %s734_s2 = inlined_call_operand.vmem [shape: f32[2,16], index: 2, kind: input, shape index: {}]   ;;  %s735_s3 = inlined_call_operand.vmem [shape: bf16[2,64,16], index: 3, kind: output, shape index: {}]  }
   0x1   :  { %s676_s14 = smov 0  }
   0x2 LB: > { %s25_s15 = sadd.s32 1, %s645_s13  ;;  %p537_p0 = scmp.ge.s32.totalorder %s649_s14, 1  ;;  %s649_s14 = sphi %s676_s14, %s13_s14   ;;  %s645_s13 = sphi %s674_s13, %s737_s13   ;;  %s641_s12 = sphi %s672_s12, %s736_s12  }
   0x3   : > { %p27_p1 = scmp.ge.s32.totalorder %s25_s15, 2  ;;  %p158_p2 = scmp.lt.s32.totalorder %s649_s14, 3 }
   0x5   : > { %s739_s15 = smov (%p27_p1, %s25_s15), 0  ;;  %p159_p3 = pnand %p537_p0, %p158_p2 }
   0x6   : > { %v621_v0 = vld [vmem:[%s733_s1] sm:$0xff] (!%p159_p3)   ;;  %vm267_vm0 = vcmask (!%p159_p3), 1044480   ;;  %v622_v1 = vld [vmem:[%s733_s1 + $0x8] sm:$0x3f] (!%p159_p3)   ;;  %vm268_vm1 = vcmask (!%p159_p3), 1045504   ;;  %p191_p4 = scmp.lt.s32.totalorder (!%p159_p3), %s641_s12, 1 }
   0x7   : > { %162 = sbr.rel (%p159_p3) target bundleno = 251 (0xfb), region = 32  ;;  %580 = vmatprep.subr.bf16.mxu0 (!%p159_p3), %v621_v0  ;;  %592 = vmatprep.subr.bf16.mxu1 (!%p159_p3), %v621_v0  ;;  %v651_v2 = vmov (!%p159_p3), 65535   ;;  %vm254_vm2 = vcmask (!%p159_p3), 220160   ;;  %v552_v10 = vld [vmem:[%s734_s2] ss:$0 sm:$0xff] (!%p159_p3)  ;;  %vm437_vm3 = vcmask (!%p159_p3), 125952  }
   0x8   : > { %581 = vmatpush3.bf16.msra.mxu0 (!%p159_p3), %v621_v0  ;;  %594 = vmatpush3.bf16.msra.mxu1 (!%p159_p3), %v621_v0  ;;  %v269_v3 = vsel (!%p159_p3), %vm267_vm0, 4294967295, %v651_v2  ;;  %v553_v12 = vld [vmem:[%s734_s2 + $0x1] ss:$0 sm:$0xff] (!%p159_p3) }
   0x9   : > { %v270_v4 = vsel (!%p159_p3), %vm268_vm1, %v269_v3, 0 }
   0xa   : > { %v272_v5 = vand.u32 (!%p159_p3), %v622_v1, %v270_v4 }
   0xc   : > { %582 = vmatprep.subr.bf16.mxu0 (!%p159_p3), %v272_v5  ;;  %593 = vmatprep.subr.bf16.mxu1 (!%p159_p3), %v272_v5 }
   0xd   : > { %583 = vmatpush3.bf16.msra.mxu0 (!%p159_p3), %v272_v5  ;;  %595 = vmatpush3.bf16.msra.mxu1 (!%p159_p3), %v272_v5 }
   0xe   : > { %s741_s12 = smov (!%p191_p4, %s641_s12), 1 }
   0xf   : > { %s564_s20 = sshll.u32 %s741_s12, 5 }
  0x10   : > { %s198_s23 = scalar_lea.vmem %s732_s0, %s564_s20  ;;  %s208_s30 = scalar_lea.vmem %s735_s3, %s564_s20 }
  0x11   : > { %v623_v6 = vld [vmem:[%s198_s23] sm:$0xff]   ;;  %v624_v7 = vld [vmem:[%s198_s23 + $0x10] sm:$0xff]   ;;  %v625_v8 = vld [vmem:[%s198_s23 + $0x8] sm:$0xff]  }
  0x12   : > { %584 = vmatprep.mubr.msk.bf16.mxu0 %vm254_vm2, %v623_v6  ;;  %588 = vmatprep.mubr.msk.bf16.mxu1 %vm254_vm2, %v624_v7  ;;  %v626_v9 = vld [vmem:[%s198_s23 + $0x18] sm:$0xff]  }
  0x13   : > { %585 = vmatmul.mubr.msk.bf16.vlgmr.msra.gmra.mrb[0].mxu0 %vm254_vm2, %v625_v8  ;;  %589 = vmatmul.mubr.msk.bf16.vlgmr.msra.gmra.mrb[0].mxu1 %vm254_vm2, %v626_v9 }
  0xe6   : > { %v586_v11 = vpop.f32.mrb[0].mxu0  ;;  %v590_v14 = vpop.f32.mrb[0].mxu1 }
  0xe7   : > { %v346_v13 = vmul.f32 %v586_v11, %v552_v10  ;;  %v308_v15 = vpop.f32.mrb[1].mxu0  ;;  %v350_v16 = vmul.f32 %v590_v14, %v552_v10  ;;  %v324_v18 = vpop.f32.mrb[1].mxu1 }
  0xe8   : > { %v344_v17 = vmul.f32 %v552_v10, %v308_v15  ;;  %v587_v19 = vpop.f32.mrb[2].mxu0  ;;  %v348_v21 = vmul.f32 %v552_v10, %v324_v18  ;;  %v591_v23 = vpop.f32.mrb[2].mxu1 }
  0xe9   : > { %v359_v20 = vadd.f32 %v553_v12, %v346_v13  ;;  %v347_v22 = vmul.f32 %v587_v19, %v552_v10  ;;  %v311_v24 = vpop.f32.mrb[3].mxu0  ;;  %v363_v25 = vadd.f32 %v553_v12, %v350_v16  ;;  %v351_v27 = vmul.f32 %v591_v23, %v552_v10  ;;  %v327_v29 = vpop.f32.mrb[3].mxu1 }
  0xea   : > { %v357_v26 = vadd.f32 %v553_v12, %v344_v17  ;;  %v345_v28 = vmul.f32 %v552_v10, %v311_v24  ;;  %v361_v31 = vadd.f32 %v553_v12, %v348_v21  ;;  %v349_v33 = vmul.f32 %v552_v10, %v327_v29 }
  0xeb   : > { %v367_v30 = vadd.f32 3.0, %v359_v20  ;;  %v360_v32 = vadd.f32 %v553_v12, %v347_v22  ;;  %v371_v34 = vadd.f32 3.0, %v363_v25  ;;  %v364_v36 = vadd.f32 %v553_v12, %v351_v27 }
  0xec   : > { %v365_v35 = vadd.f32 3.0, %v357_v26  ;;  %v358_v37 = vadd.f32 %v553_v12, %v345_v28  ;;  %v369_v39 = vadd.f32 3.0, %v361_v31  ;;  %v362_v41 = vadd.f32 %v553_v12, %v349_v33 }
  0xed   : > { %v375_v38 = vmax.f32 %v367_v30, 0.0  ;;  %v368_v40 = vadd.f32 3.0, %v360_v32  ;;  %v379_v42 = vmax.f32 %v371_v34, 0.0  ;;  %v372_v44 = vadd.f32 3.0, %v364_v36 }
  0xee   : > { %v373_v43 = vmax.f32 %v365_v35, 0.0  ;;  %v366_v45 = vadd.f32 3.0, %v358_v37  ;;  %v377_v47 = vmax.f32 %v369_v39, 0.0  ;;  %v370_v49 = vadd.f32 3.0, %v362_v41 }
  0xef   : > { %v383_v46 = vmin.f32 %v375_v38, 6.0  ;;  %v376_v48 = vmax.f32 %v368_v40, 0.0  ;;  %v387_v50 = vmin.f32 %v379_v42, 6.0  ;;  %v380_v52 = vmax.f32 %v372_v44, 0.0 }
  0xf0   : > { %v381_v51 = vmin.f32 %v373_v43, 6.0  ;;  %v374_v53 = vmax.f32 %v366_v45, 0.0  ;;  %v385_v55 = vmin.f32 %v377_v47, 6.0  ;;  %v378_v57 = vmax.f32 %v370_v49, 0.0 }
  0xf1   : > { %v391_v54 = vmul.f32 %v383_v46, %v359_v20  ;;  %v384_v56 = vmin.f32 %v376_v48, 6.0  ;;  %v395_v58 = vmul.f32 %v387_v50, %v363_v25  ;;  %v388_v60 = vmin.f32 %v380_v52, 6.0 }
  0xf2   : > { %v389_v59 = vmul.f32 %v381_v51, %v357_v26  ;;  %v382_v61 = vmin.f32 %v374_v53, 6.0  ;;  %v393_v63 = vmul.f32 %v385_v55, %v361_v31  ;;  %v386_v1 = vmin.f32 %v378_v57, 6.0 }
  0xf3   : > { %v399_v62 = vmul.f32 0.16666667, %v391_v54  ;;  %v392_v0 = vmul.f32 %v384_v56, %v360_v32  ;;  %v403_v2 = vmul.f32 0.16666667, %v395_v58  ;;  %v396_v4 = vmul.f32 %v388_v60, %v364_v36 }
  0xf4   : > { %v397_v3 = vmul.f32 0.16666667, %v389_v59  ;;  %v390_v5 = vmul.f32 %v382_v61, %v358_v37  ;;  %v401_v7 = vmul.f32 0.16666667, %v393_v63  ;;  %v394_v9 = vmul.f32 %v386_v1, %v362_v41 }
  0xf5   : > { %v568_v6 = vpack.c.bf16 %v399_v62, %v399_v62  ;;  %v400_v8 = vmul.f32 0.16666667, %v392_v0  ;;  %v572_v10 = vpack.c.bf16 %v403_v2, %v403_v2  ;;  %v404_v12 = vmul.f32 0.16666667, %v396_v4 }
  0xf6   : > { %v566_v11 = vpack.c.bf16 %v397_v3, %v397_v3  ;;  %v398_v13 = vmul.f32 0.16666667, %v390_v5  ;;  %v570_v14 = vpack.c.bf16 %v401_v7, %v401_v7  ;;  %v402_v16 = vmul.f32 0.16666667, %v394_v9 }
  0xf7   : > { %440 = vst.msk [vmem:[%s208_s30 + $0x8] sm:$0xf] %vm437_vm3, %v568_v6  ;;  %v569_v15 = vpack.c.bf16 %v400_v8, %v400_v8  ;;  %444 = vst.msk [vmem:[%s208_s30 + $0x18] sm:$0xf] %vm437_vm3, %v572_v10  ;;  %v573_v17 = vpack.c.bf16 %v404_v12, %v404_v12 }
  0xf8   : > { %438 = vst.msk [vmem:[%s208_s30] sm:$0xf] %vm437_vm3, %v566_v11  ;;  %v567_v18 = vpack.c.bf16 %v398_v13, %v398_v13  ;;  %442 = vst.msk [vmem:[%s208_s30 + $0x10] sm:$0xf] %vm437_vm3, %v570_v14  ;;  %v571_v19 = vpack.c.bf16 %v402_v16, %v402_v16 }
  0xf9   : > { %441 = vst.msk [vmem:[%s208_s30 + $0xc] sm:$0xf] %vm437_vm3, %v569_v15  ;;  %445 = vst.msk [vmem:[%s208_s30 + $0x1c] sm:$0xf] %vm437_vm3, %v573_v17 }
  0xfa   : > { %439 = vst.msk [vmem:[%s208_s30 + $0x4] sm:$0xf] %vm437_vm3, %v567_v18  ;;  %443 = vst.msk [vmem:[%s208_s30 + $0x14] sm:$0xf] %vm437_vm3, %v571_v19 }
  0xfb PF: > { %s13_s14 = sadd.s32 1, %s649_s14   ;;  %s736_s12 = smov %s645_s13 }
  0xfc   : > { %p10_p5 = scmp.ge.s32.totalorder %s13_s14, 4   ;;  %s737_s13 = smov %s739_s15 }
  0xfe   :  { %12 = sbr.rel (!%p10_p5) target bundleno = 2 (0x2), region = 62 }

</bundles_post_ra>
